<compile_context>
chip_gen: v5e
topology: v5e:2x2
jax: 0.10.0
libtpu: 0.0.40
codegen_flags: <defaults>
</compile_context>

<pallas_src>
import functools

import jax
import jax.numpy as jnp
from jax import lax
from jax.experimental import pallas as pl
from jax.experimental.pallas import tpu as pltpu


# ------------------------- hardware-aware defaults --------------------------
def _device_kind() -> str:
    try:
        return jax.devices()[0].device_kind.lower()
    except Exception:
        return ""


def _elementwise_bf16() -> bool:
    # v6e/v7x have native bf16 VPU/EUP; v5e (and older) do not -> f32 elementwise there.
    k = _device_kind()
    return ("v6" in k) or ("v7" in k)


def _default_tile_b(B: int) -> int:
    # Fill the MXU M dimension: 128 rows on v5e (4x128^2 MXU), 256 on v6e/v7x (2x256^2).
    # For B <= cap take the whole batch in one grid step (grid=(1,)); B=16 also gives
    # dense bf16 sublane packing (16 sublanes per packed vreg).
    cap = 128 if "v5" in _device_kind() else 256
    return B if B <= cap else cap
    # NOTE: if B > cap and B % cap != 0, padded rows of the last tile may run
    # sigmoid on garbage VMEM; rows are independent and masked on store, so the
    # result stays correct.


# ------------------------------ shared math ---------------------------------
def _mlp_block(t, x, w1, wt, b1, w2, b2, *, bf16_ew):
    """silu(x@W1 + t*wt + b1) @ W2 + b2 ; bf16 MXU inputs, f32 MXU accumulation."""
    h = jnp.dot(x.astype(jnp.bfloat16), w1, preferred_element_type=jnp.float32)
    if bf16_ew:
        # v6e/v7x: bias-add + SiLU in bf16 (native VPU/EUP) -> half the elementwise
        # traffic and no extra f32->bf16 cast before the second matmul.
        h = h.astype(jnp.bfloat16) + (t * wt + b1).astype(jnp.bfloat16)
        h = h * jax.nn.sigmoid(h)
    else:
        # v5e: no bf16 VPU/EUP -> keep elementwise math in f32.
        h = h + t * wt + b1
        h = h * jax.nn.sigmoid(h)
        h = h.astype(jnp.bfloat16)
    return jnp.dot(h, w2, preferred_element_type=jnp.float32) + b2


# --------------------------- single-NFE kernel ------------------------------
def _vf_mlp_kernel(t_ref, x_ref, w1_ref, wt_ref, b1_ref, w2_ref, b2_ref, o_ref,
                   *, bf16_ew):
    t = t_ref[0]                                       # single SMEM scalar time
    out = _mlp_block(t, x_ref[...], w1_ref[...], wt_ref[...], b1_ref[...],
                     w2_ref[...], b2_ref[...], bf16_ew=bf16_ew)
    o_ref[...] = out.astype(o_ref.dtype)


def _vf_mlp_pallas(t_smem, x, w1, wt, b1, w2, b2, *, tile_b=None):
    B, D = x.shape
    H = w1.shape[1]
    tile_b = _default_tile_b(B) if tile_b is None else tile_b
    bf16_ew = _elementwise_bf16()
    # TODO(synk): if D/H scale beyond ~2-3K, switch the whole-weights-resident
    # const blocks to a K-tiled accumulator grid (would exceed v7x's 64 MiB VMEM).
    cost = pl.CostEstimate(
        flops=4 * B * D * H,
        transcendentals=B * H,
        bytes_accessed=int(x.size * 4 + w1.size * 2 + w2.size * 2
                           + (wt.size + b1.size + b2.size) * 4 + B * D * 4),
    )

    def build(single_buffer):
        def const(shape):
            if single_buffer:
                # Constant-index weights never change block -> no double-buffering.
                return pl.BlockSpec(shape, lambda i: (0, 0),
                                    pipeline_mode=pl.Buffered(1))
            return pl.BlockSpec(shape, lambda i: (0, 0))

        return pl.pallas_call(
            functools.partial(_vf_mlp_kernel, bf16_ew=bf16_ew),
            out_shape=jax.ShapeDtypeStruct((B, D), jnp.float32),
            grid_spec=pltpu.PrefetchScalarGridSpec(
                num_scalar_prefetch=0,
                grid=(pl.cdiv(B, tile_b),),
                in_specs=[
                    pl.BlockSpec(memory_space=pltpu.MemorySpace.SMEM),   # t scalar
                    pl.BlockSpec((tile_b, D), lambda i: (i, 0)),         # x batch tile
                    const((D, H)),                                       # W1 (bf16)
                    const((1, H)),                                       # w_t
                    const((1, H)),                                       # b1
                    const((H, D)),                                       # W2 (bf16)
                    const((1, D)),                                       # b2
                ],
                out_specs=pl.BlockSpec((tile_b, D), lambda i: (i, 0)),
            ),
            compiler_params=pltpu.CompilerParams(dimension_semantics=("parallel",)),
            cost_estimate=cost,
        )

    args = (t_smem, x, w1, wt, b1, w2, b2)
    try:
        return build(True)(*args)
    except Exception:
        # TODO(synk): fallback for jax builds that reject pl.Buffered(1) single-buffering.
        return build(False)(*args)


# ------------------ amortized multi-NFE (fused Euler) kernel ----------------
def _euler_kernel(sc_ref, x0_ref, w1_ref, wt_ref, b1_ref, w2_ref, b2_ref, o_ref,
                  *, n_steps, bf16_ew):
    t0 = sc_ref[0]
    dt = sc_ref[1]
    # Hoist all loads: weights are VMEM-resident (constant index maps, single grid step).
    w1 = w1_ref[...]; wt = wt_ref[...]; b1 = b1_ref[...]
    w2 = w2_ref[...]; b2 = b2_ref[...]

    def body(i, x):
        t = t0 + dt * i.astype(jnp.float32)
        dx = _mlp_block(t, x, w1, wt, b1, w2, b2, bf16_ew=bf16_ew)
        return x + dt * dx

    # All solver steps inside ONE grid step: no per-step pipeline bookkeeping and
    # the scheduler can overlap the two matmuls across adjacent steps.  State is
    # carried as a loop value and written straight to the output block (no scratch).
    xT = lax.fori_loop(0, n_steps, body, x0_ref[...], unroll=n_steps <= 32)
    o_ref[...] = xT.astype(o_ref.dtype)


def _euler_pallas(scalars, x0, w1, wt, b1, w2, b2, n_steps, *, tile_b=None):
    B, D = x0.shape
    H = w1.shape[1]
    tile_b = _default_tile_b(B) if tile_b is None else tile_b
    bf16_ew = _elementwise_bf16()
    cost = pl.CostEstimate(
        flops=4 * B * D * H * n_steps,
        transcendentals=B * H * n_steps,
        bytes_accessed=int(2 * B * D * 4 + w1.size * 2 + w2.size * 2
                           + (wt.size + b1.size + b2.size) * 4),
    )

    def build(single_buffer):
        def const(shape):
            if single_buffer:
                return pl.BlockSpec(shape, lambda i: (0, 0),
                                    pipeline_mode=pl.Buffered(1))
            return pl.BlockSpec(shape, lambda i: (0, 0))

        return pl.pallas_call(
            functools.partial(_euler_kernel, n_steps=n_steps, bf16_ew=bf16_ew),
            out_shape=jax.ShapeDtypeStruct((B, D), jnp.float32),
            grid_spec=pltpu.PrefetchScalarGridSpec(
                num_scalar_prefetch=0,
                grid=(pl.cdiv(B, tile_b),),   # batch-parallel: uses both TCs on v7x
                in_specs=[
                    pl.BlockSpec(memory_space=pltpu.MemorySpace.SMEM),   # (t0, dt)
                    pl.BlockSpec((tile_b, D), lambda i: (i, 0)),         # x0 batch tile
                    const((D, H)), const((1, H)), const((1, H)),
                    const((H, D)), const((1, D)),
                ],
                out_specs=pl.BlockSpec((tile_b, D), lambda i: (i, 0)),
            ),
            compiler_params=pltpu.CompilerParams(dimension_semantics=("parallel",)),
            cost_estimate=cost,
        )

    args = (scalars, x0, w1, wt, b1, w2, b2)
    try:
        return build(True)(*args)
    except Exception:
        # TODO(synk): fallback for jax builds that reject pl.Buffered(1) single-buffering.
        return build(False)(*args)


# ----------------------------- wrapper (glue) --------------------------------
class SyntheticVectorField:
    """Deterministic inner model: model(t, x, cond) -> dx/dt, shape (B, D)."""

    def __init__(self, dim, hidden, key):
        k1, k2, k3 = jax.random.split(key, 3)
        # Matmul weights in bf16 (MXU-native); elementwise params in f32.
        self.w1 = (jax.random.normal(k1, (dim, hidden), jnp.float32)
                   / jnp.sqrt(dim)).astype(jnp.bfloat16)
        self.wt = jax.random.normal(k3, (1, hidden), jnp.float32) * 0.1
        self.b1 = jnp.zeros((1, hidden), jnp.float32)
        self.w2 = (jax.random.normal(k2, (hidden, dim), jnp.float32)
                   / jnp.sqrt(hidden)).astype(jnp.bfloat16)
        self.b2 = jnp.zeros((1, dim), jnp.float32)

    def __call__(self, t, x, cond):
        # `cond` (the literal 0 from torch_wrapper) is unused, as in pita inner models.
        t = jnp.asarray(t, jnp.float32)
        if t.ndim > 0 and t.shape[0] > 1:
            # torch_wrapper only ever broadcasts ONE scalar time across the batch.
            # TODO(synk): genuinely per-sample times need a VMEM t-column kernel path.
            raise NotImplementedError("per-sample time vectors are not supported")
        t_smem = t.reshape(-1) if t.ndim > 0 else t.reshape(1)   # single SMEM scalar
        return _vf_mlp_pallas(t_smem, x, self.w1, self.wt,
                              self.b1, self.w2, self.b2)


class PallasTorchWrapper:
    """JAX/Pallas port of torch_wrapper: torchdyn-compatible (t, x) -> dx/dt."""

    def __init__(self, model):
        self.model = model
        self.nfe = 0

    def __call__(self, t, x, *args, **kwargs):
        self.nfe += 1                       # host-side NFE bookkeeping, as in torch
        t = jnp.asarray(t, dtype=jnp.float32)
        # torch_wrapper materializes `t.view(1) * ones(B)`; the model collapses it
        # right back to a single shared scalar, so we skip the per-NFE broadcast
        # (one fewer XLA op + HBM array on a launch-overhead-bound kernel).
        if (self.nfe + 1) % 10 == 0:
            print(f"nfe: {self.nfe}")       # host-side print, as in torch_wrapper
        # TODO(synk): if single-NFE calls dominate at scale, prefetch the next call's
        # weights cross-call (P10) instead of re-DMAing W1/W2 from HBM every NFE.
        return self.model(t, x, 0)

    def integrate_euler(self, x0, t0, t1, n_steps):
        """Preferred execution path: n_steps NFEs fused into ONE pallas_call;
        weights are DMA'd once and held VMEM-resident, all steps run in-kernel."""
        dt = (float(t1) - float(t0)) / n_steps
        scalars = jnp.array([t0, dt], dtype=jnp.float32)
        m = self.model
        out = _euler_pallas(scalars, x0, m.w1, m.wt, m.b1, m.w2, m.b2, n_steps)
        self.nfe += n_steps  # each Euler step is one function evaluation
        # TODO(synk): the every-10th-NFE print is a host side effect and is skipped
        # inside the fused multi-step kernel.
        return out


# --------------------------- pure-JAX references -----------------------------
def _vf_reference(t_scalar, x, m: SyntheticVectorField):
    return _mlp_block(t_scalar, x, m.w1, m.wt, m.b1, m.w2, m.b2,
                      bf16_ew=_elementwise_bf16())


def _euler_reference(x0, t0, dt, n_steps, m: SyntheticVectorField):
    def body(i, x):
        t = t0 + dt * jnp.float32(i)
        return x + dt * _vf_reference(t, x, m)
    return lax.fori_loop(0, n_steps, body, x0)


if __name__ == "__main__":
    # Lane-dense dims (multiples of 128 on the feature axes), MXU-friendly batch.
    B, D, H = 16, 128, 128
    key = jax.random.PRNGKey(0)
    kx, km = jax.random.split(key)

    x = jax.random.normal(kx, (B, D), jnp.float32)
    t = jnp.float32(0.3)  # scalar time, as torchdyn passes it

    model = SyntheticVectorField(D, H, km)
    wrapper = PallasTorchWrapper(model)

    # 1) single NFE — torch_wrapper.forward semantics
    out = jax.block_until_ready(wrapper(t, x))
    ref = _vf_reference(jnp.float32(0.3), x, model)
    assert out.shape == (B, D), out.shape
    assert jnp.allclose(out, ref, atol=2e-2, rtol=2e-2), "single-eval mismatch"

    # 2) amortized multi-NFE path — one pallas_call, all steps fused in-kernel
    n_steps = 16
    xT = jax.block_until_ready(wrapper.integrate_euler(x, 0.0, 1.0, n_steps))
    refT = _euler_reference(x, jnp.float32(0.0), jnp.float32(1.0 / n_steps),
                            n_steps, model)
    assert xT.shape == (B, D), xT.shape
    assert jnp.allclose(xT, refT, atol=5e-2, rtol=5e-2), "fused-Euler mismatch"
    assert wrapper.nfe == 1 + n_steps

    print("KERNEL_OK")
</pallas_src>

<mosaic_0001>
module attributes {stable_mosaic.version = 11 : i64} {
  func.func @_vf_mlp_kernel(%arg0: i32, %arg1: memref<1xf32, #tpu.memory_space<smem>>, %arg2: memref<16x128xf32, #tpu.memory_space<vmem>>, %arg3: memref<128x128xbf16, #tpu.memory_space<vmem>>, %arg4: memref<1x128xf32, #tpu.memory_space<vmem>>, %arg5: memref<1x128xf32, #tpu.memory_space<vmem>>, %arg6: memref<128x128xbf16, #tpu.memory_space<vmem>>, %arg7: memref<1x128xf32, #tpu.memory_space<vmem>>, %arg8: memref<16x128xf32, #tpu.memory_space<vmem>>) attributes {dimension_semantics = [#tpu.dimension_semantics<parallel>], iteration_bounds = array<i64: 1>, scalar_prefetch = 0 : i64, scratch_operands = 0 : i64, tpu.core_type = #tpu.core_type<tc>, window_params = [{transform_indices = @transform_0, window_bounds = array<i64: 1>}, {transform_indices = @transform_1, window_bounds = array<i64: 16, 128>}, {pipeline_mode = #tpu.pipeline_mode<synchronous>, transform_indices = @transform_2, window_bounds = array<i64: 128, 128>}, {pipeline_mode = #tpu.pipeline_mode<synchronous>, transform_indices = @transform_3, window_bounds = array<i64: 1, 128>}, {pipeline_mode = #tpu.pipeline_mode<synchronous>, transform_indices = @transform_4, window_bounds = array<i64: 1, 128>}, {pipeline_mode = #tpu.pipeline_mode<synchronous>, transform_indices = @transform_5, window_bounds = array<i64: 128, 128>}, {pipeline_mode = #tpu.pipeline_mode<synchronous>, transform_indices = @transform_6, window_bounds = array<i64: 1, 128>}, {transform_indices = @transform_7, window_bounds = array<i64: 16, 128>}]} {
    %c0 = arith.constant 0 : index
    %0 = memref.load %arg1[%c0] : memref<1xf32, #tpu.memory_space<smem>>
    %c0_0 = arith.constant 0 : index
    %c0_1 = arith.constant 0 : index
    %1 = vector.load %arg2[%c0_0, %c0_1] : memref<16x128xf32, #tpu.memory_space<vmem>>, vector<16x128xf32>
    %c0_2 = arith.constant 0 : index
    %c0_3 = arith.constant 0 : index
    %2 = vector.load %arg3[%c0_2, %c0_3] : memref<128x128xbf16, #tpu.memory_space<vmem>>, vector<128x128xbf16>
    %c0_4 = arith.constant 0 : index
    %c0_5 = arith.constant 0 : index
    %3 = vector.load %arg4[%c0_4, %c0_5] : memref<1x128xf32, #tpu.memory_space<vmem>>, vector<1x128xf32>
    %c0_6 = arith.constant 0 : index
    %c0_7 = arith.constant 0 : index
    %4 = vector.load %arg5[%c0_6, %c0_7] : memref<1x128xf32, #tpu.memory_space<vmem>>, vector<1x128xf32>
    %c0_8 = arith.constant 0 : index
    %c0_9 = arith.constant 0 : index
    %5 = vector.load %arg6[%c0_8, %c0_9] : memref<128x128xbf16, #tpu.memory_space<vmem>>, vector<128x128xbf16>
    %c0_10 = arith.constant 0 : index
    %c0_11 = arith.constant 0 : index
    %6 = vector.load %arg7[%c0_10, %c0_11] : memref<1x128xf32, #tpu.memory_space<vmem>>, vector<1x128xf32>
    %7 = arith.truncf %1 : vector<16x128xf32> to vector<16x128xbf16>
    %cst = arith.constant dense<0.000000e+00> : vector<16x128xf32>
    %8 = tpu.matmul %7, %2, %cst {dimension_numbers = #tpu.dot_dimension_numbers<[1], [0], [0], [1], [0, 0, 1, 1], [], []>} : vector<16x128xbf16>, vector<128x128xbf16>, vector<16x128xf32> -> vector<16x128xf32>
    %9 = vector.broadcast %0 : f32 to vector<1x128xf32>
    %10 = arith.mulf %9, %3 : vector<1x128xf32>
    %11 = vector.broadcast %10 : vector<1x128xf32> to vector<16x128xf32>
    %12 = arith.addf %8, %11 : vector<16x128xf32>
    %13 = vector.broadcast %4 : vector<1x128xf32> to vector<16x128xf32>
    %14 = arith.addf %12, %13 : vector<16x128xf32>
    %15 = arith.negf %14 : vector<16x128xf32>
    %16 = math.exp %15 : vector<16x128xf32>
    %cst_12 = arith.constant 1.000000e+00 : f32
    %17 = vector.broadcast %cst_12 : f32 to vector<16x128xf32>
    %18 = arith.addf %17, %16 : vector<16x128xf32>
    %19 = arith.divf %17, %18 : vector<16x128xf32>
    %20 = arith.mulf %14, %19 : vector<16x128xf32>
    %21 = arith.truncf %20 : vector<16x128xf32> to vector<16x128xbf16>
    %cst_13 = arith.constant dense<0.000000e+00> : vector<16x128xf32>
    %22 = tpu.matmul %21, %5, %cst_13 {dimension_numbers = #tpu.dot_dimension_numbers<[1], [0], [0], [1], [0, 0, 1, 1], [], []>} : vector<16x128xbf16>, vector<128x128xbf16>, vector<16x128xf32> -> vector<16x128xf32>
    %23 = vector.broadcast %6 : vector<1x128xf32> to vector<16x128xf32>
    %24 = arith.addf %22, %23 : vector<16x128xf32>
    %c0_14 = arith.constant 0 : index
    %c0_15 = arith.constant 0 : index
    %25 = vector.load %arg8[%c0_14, %c0_15] : memref<16x128xf32, #tpu.memory_space<vmem>>, vector<16x128xf32>
    tpu.vector_store %arg8[%c0_14, %c0_15], %24 {strides = array<i32>} : memref<16x128xf32, #tpu.memory_space<vmem>>, vector<16x128xf32>,
    return
  }
  func.func @transform_0(%arg0: i32) -> i32 {
    %c0_i32 = arith.constant 0 : i32
    %c0_i32_0 = arith.constant 0 : i32
    return %c0_i32 : i32
  }
  func.func @transform_1(%arg0: i32) -> (i32, i32) {
    %c0_i32 = arith.constant 0 : i32
    %c0_i32_0 = arith.constant 0 : i32
    return %arg0, %c0_i32 : i32, i32
  }
  func.func @transform_2(%arg0: i32) -> (i32, i32) {
    %c0_i32 = arith.constant 0 : i32
    %c0_i32_0 = arith.constant 0 : i32
    %c0_i32_1 = arith.constant 0 : i32
    return %c0_i32, %c0_i32_0 : i32, i32
  }
  func.func @transform_3(%arg0: i32) -> (i32, i32) {
    %c0_i32 = arith.constant 0 : i32
    %c0_i32_0 = arith.constant 0 : i32
    %c0_i32_1 = arith.constant 0 : i32
    return %c0_i32, %c0_i32_0 : i32, i32
  }
  func.func @transform_4(%arg0: i32) -> (i32, i32) {
    %c0_i32 = arith.constant 0 : i32
    %c0_i32_0 = arith.constant 0 : i32
    %c0_i32_1 = arith.constant 0 : i32
    return %c0_i32, %c0_i32_0 : i32, i32
  }
  func.func @transform_5(%arg0: i32) -> (i32, i32) {
    %c0_i32 = arith.constant 0 : i32
    %c0_i32_0 = arith.constant 0 : i32
    %c0_i32_1 = arith.constant 0 : i32
    return %c0_i32, %c0_i32_0 : i32, i32
  }
  func.func @transform_6(%arg0: i32) -> (i32, i32) {
    %c0_i32 = arith.constant 0 : i32
    %c0_i32_0 = arith.constant 0 : i32
    %c0_i32_1 = arith.constant 0 : i32
    return %c0_i32, %c0_i32_0 : i32, i32
  }
  func.func @transform_7(%arg0: i32) -> (i32, i32) {
    %c0_i32 = arith.constant 0 : i32
    %c0_i32_0 = arith.constant 0 : i32
    return %arg0, %c0_i32 : i32, i32
  }
}

module attributes {stable_mosaic.version = 11 : i64} {
  func.func @_vf_mlp_kernel(%arg0: i32, %arg1: memref<1xf32, #tpu.memory_space<smem>>, %arg2: memref<16x128xf32, #tpu.memory_space<vmem>>, %arg3: memref<128x128xbf16, #tpu.memory_space<vmem>>, %arg4: memref<1x128xf32, #tpu.memory_space<vmem>>, %arg5: memref<1x128xf32, #tpu.memory_space<vmem>>, %arg6: memref<128x128xbf16, #tpu.memory_space<vmem>>, %arg7: memref<1x128xf32, #tpu.memory_space<vmem>>, %arg8: memref<16x128xf32, #tpu.memory_space<vmem>>) attributes {dimension_semantics = [#tpu.dimension_semantics<parallel>], iteration_bounds = array<i64: 1>, scalar_prefetch = 0 : i64, scratch_operands = 0 : i64, tpu.core_type = #tpu.core_type<tc>, window_params = [{transform_indices = @transform_0, window_bounds = array<i64: 1>}, {transform_indices = @transform_1, window_bounds = array<i64: 16, 128>}, {pipeline_mode = #tpu.pipeline_mode<synchronous>, transform_indices = @transform_2, window_bounds = array<i64: 128, 128>}, {pipeline_mode = #tpu.pipeline_mode<synchronous>, transform_indices = @transform_3, window_bounds = array<i64: 1, 128>}, {pipeline_mode = #tpu.pipeline_mode<synchronous>, transform_indices = @transform_4, window_bounds = array<i64: 1, 128>}, {pipeline_mode = #tpu.pipeline_mode<synchronous>, transform_indices = @transform_5, window_bounds = array<i64: 128, 128>}, {pipeline_mode = #tpu.pipeline_mode<synchronous>, transform_indices = @transform_6, window_bounds = array<i64: 1, 128>}, {transform_indices = @transform_7, window_bounds = array<i64: 16, 128>}]} {
    %c0 = arith.constant 0 : index
    %0 = memref.load %arg1[%c0] : memref<1xf32, #tpu.memory_space<smem>>
    %c0_0 = arith.constant 0 : index
    %c0_1 = arith.constant 0 : index
    %1 = vector.load %arg2[%c0_0, %c0_1] : memref<16x128xf32, #tpu.memory_space<vmem>>, vector<16x128xf32>
    %c0_2 = arith.constant 0 : index
    %c0_3 = arith.constant 0 : index
    %2 = vector.load %arg3[%c0_2, %c0_3] : memref<128x128xbf16, #tpu.memory_space<vmem>>, vector<128x128xbf16>
    %c0_4 = arith.constant 0 : index
    %c0_5 = arith.constant 0 : index
    %3 = vector.load %arg4[%c0_4, %c0_5] : memref<1x128xf32, #tpu.memory_space<vmem>>, vector<1x128xf32>
    %c0_6 = arith.constant 0 : index
    %c0_7 = arith.constant 0 : index
    %4 = vector.load %arg5[%c0_6, %c0_7] : memref<1x128xf32, #tpu.memory_space<vmem>>, vector<1x128xf32>
    %c0_8 = arith.constant 0 : index
    %c0_9 = arith.constant 0 : index
    %5 = vector.load %arg6[%c0_8, %c0_9] : memref<128x128xbf16, #tpu.memory_space<vmem>>, vector<128x128xbf16>
    %c0_10 = arith.constant 0 : index
    %c0_11 = arith.constant 0 : index
    %6 = vector.load %arg7[%c0_10, %c0_11] : memref<1x128xf32, #tpu.memory_space<vmem>>, vector<1x128xf32>
    %7 = arith.truncf %1 : vector<16x128xf32> to vector<16x128xbf16>
    %cst = arith.constant dense<0.000000e+00> : vector<16x128xf32>
    %8 = tpu.matmul %7, %2, %cst {dimension_numbers = #tpu.dot_dimension_numbers<[1], [0], [0], [1], [0, 0, 1, 1], [], []>} : vector<16x128xbf16>, vector<128x128xbf16>, vector<16x128xf32> -> vector<16x128xf32>
    %9 = vector.broadcast %0 : f32 to vector<1x128xf32>
    %10 = arith.mulf %9, %3 : vector<1x128xf32>
    %11 = vector.broadcast %10 : vector<1x128xf32> to vector<16x128xf32>
    %12 = arith.addf %8, %11 : vector<16x128xf32>
    %13 = vector.broadcast %4 : vector<1x128xf32> to vector<16x128xf32>
    %14 = arith.addf %12, %13 : vector<16x128xf32>
    %15 = arith.negf %14 : vector<16x128xf32>
    %16 = math.exp %15 : vector<16x128xf32>
    %cst_12 = arith.constant 1.000000e+00 : f32
    %17 = vector.broadcast %cst_12 : f32 to vector<16x128xf32>
    %18 = arith.addf %17, %16 : vector<16x128xf32>
    %19 = arith.divf %17, %18 : vector<16x128xf32>
    %20 = arith.mulf %14, %19 : vector<16x128xf32>
    %21 = arith.truncf %20 : vector<16x128xf32> to vector<16x128xbf16>
    %cst_13 = arith.constant dense<0.000000e+00> : vector<16x128xf32>
    %22 = tpu.matmul %21, %5, %cst_13 {dimension_numbers = #tpu.dot_dimension_numbers<[1], [0], [0], [1], [0, 0, 1, 1], [], []>} : vector<16x128xbf16>, vector<128x128xbf16>, vector<16x128xf32> -> vector<16x128xf32>
    %23 = vector.broadcast %6 : vector<1x128xf32> to vector<16x128xf32>
    %24 = arith.addf %22, %23 : vector<16x128xf32>
    %c0_14 = arith.constant 0 : index
    %c0_15 = arith.constant 0 : index
    %25 = vector.load %arg8[%c0_14, %c0_15] : memref<16x128xf32, #tpu.memory_space<vmem>>, vector<16x128xf32>
    tpu.vector_store %arg8[%c0_14, %c0_15], %24 {strides = array<i32>} : memref<16x128xf32, #tpu.memory_space<vmem>>, vector<16x128xf32>,
    return
  }
  func.func @transform_0(%arg0: i32) -> i32 {
    %c0_i32 = arith.constant 0 : i32
    %c0_i32_0 = arith.constant 0 : i32
    return %c0_i32 : i32
  }
  func.func @transform_1(%arg0: i32) -> (i32, i32) {
    %c0_i32 = arith.constant 0 : i32
    %c0_i32_0 = arith.constant 0 : i32
    return %arg0, %c0_i32 : i32, i32
  }
  func.func @transform_2(%arg0: i32) -> (i32, i32) {
    %c0_i32 = arith.constant 0 : i32
    %c0_i32_0 = arith.constant 0 : i32
    %c0_i32_1 = arith.constant 0 : i32
    return %c0_i32, %c0_i32_0 : i32, i32
  }
  func.func @transform_3(%arg0: i32) -> (i32, i32) {
    %c0_i32 = arith.constant 0 : i32
    %c0_i32_0 = arith.constant 0 : i32
    %c0_i32_1 = arith.constant 0 : i32
    return %c0_i32, %c0_i32_0 : i32, i32
  }
  func.func @transform_4(%arg0: i32) -> (i32, i32) {
    %c0_i32 = arith.constant 0 : i32
    %c0_i32_0 = arith.constant 0 : i32
    %c0_i32_1 = arith.constant 0 : i32
    return %c0_i32, %c0_i32_0 : i32, i32
  }
  func.func @transform_5(%arg0: i32) -> (i32, i32) {
    %c0_i32 = arith.constant 0 : i32
    %c0_i32_0 = arith.constant 0 : i32
    %c0_i32_1 = arith.constant 0 : i32
    return %c0_i32, %c0_i32_0 : i32, i32
  }
  func.func @transform_6(%arg0: i32) -> (i32, i32) {
    %c0_i32 = arith.constant 0 : i32
    %c0_i32_0 = arith.constant 0 : i32
    %c0_i32_1 = arith.constant 0 : i32
    return %c0_i32, %c0_i32_0 : i32, i32
  }
  func.func @transform_7(%arg0: i32) -> (i32, i32) {
    %c0_i32 = arith.constant 0 : i32
    %c0_i32_0 = arith.constant 0 : i32
    return %arg0, %c0_i32 : i32, i32
  }
}

</mosaic_0001>

<bundles_post_ra>
// kernel: tpu_custom_call.1
= control target key start
LH: loop header
LB: loop body
LE: loop exit
PB: predicated region body
PF: predicated region fallthrough
CT: control target
= control target key end

     0   :  { %13 = vsyncpa [#allocation4], 0  ;;  %s594_s0 = inlined_call_operand.<no memory space> [shape: f32[1], index: 0, kind: input, shape index: {}]   ;;  %s595_s1 = inlined_call_operand.hbm [shape: f32[16,128], index: 1, kind: input, shape index: {}]   ;;  %s596_s2 = inlined_call_operand.hbm [shape: bf16[128,128], index: 2, kind: input, shape index: {}]   ;;  %s597_s3 = inlined_call_operand.vmem [shape: f32[1,128], index: 3, kind: input, shape index: {}]   ;;  %s598_s4 = inlined_call_operand.vmem [shape: f32[1,128], index: 4, kind: input, shape index: {}]   ;;  %s599_s5 = inlined_call_operand.hbm [shape: bf16[128,128], index: 5, kind: input, shape index: {}]   ;;  %s600_s6 = inlined_call_operand.vmem [shape: f32[1,128], index: 6, kind: input, shape index: {}]   ;;  %s601_s7 = inlined_call_operand.hbm [shape: f32[16,128], index: 7, kind: output, shape index: {}]  }
   0x1   :  { %14 = vsyncpa [#allocation7], 0  ;;  %s35_s26 = sshll.u32 %s596_s2, 4  ;;  %s36_s26 = int_to_ptr.hbm [resolvable:$true] %s35_s26 }
   0x2   :  { %15 = vsyncpa [#allocation5], 0  ;;  %s516_s27 = smov [#allocation6]   ;;  %s22_s8 = sshll.u32 %s595_s1, 4  ;;  %s23_s8 = int_to_ptr.hbm [resolvable:$true] %s22_s8 }
   0x3   :  { %s37_s28 = sshll.u32 %s516_s27, 4  ;;  %s517_s9 = smov 64   ;;  %s38_s28 = int_to_ptr.vmem [resolvable:$true] %s37_s28 }
   0x4   :  { %s518_s10 = smov 4   ;;  %s519_s11 = smov [#allocation3]  }
   0x5   :  { %43 = dma.hbm_to_vmem [thread:$0]  %s36_s26, 1024, %s38_s28, [#allocation7], %s517_s9, %s517_s9, %s518_s10  }
   0x6   :  { %s24_s12 = sshll.u32 %s519_s11, 4  ;;  %s520_s13 = smov 128   ;;  %s25_s12 = int_to_ptr.vmem [resolvable:$true] %s24_s12 }
   0x7   :  { %s521_s14 = smov 8   ;;  %s52_s16 = sshll.u32 %s599_s5, 4  ;;  %s53_s16 = int_to_ptr.hbm [resolvable:$true] %s52_s16 }
   0x8   :  { %30 = dma.hbm_to_vmem [thread:$0]  %s23_s8, 256, %s25_s12, [#allocation4], %s520_s13, %s520_s13, %s521_s14  }
   0x9   :  { %s522_s17 = smov [#allocation8]  }
   0xa   :  { %s54_s1 = sshll.u32 %s522_s17, 4  ;;  %s55_s1 = int_to_ptr.vmem [resolvable:$true] %s54_s1 }
   0xb   :  { %60 = dma.hbm_to_vmem [thread:$0]  %s53_s16, 1024, %s55_s1, [#allocation7], %s517_s9, %s517_s9, %s518_s10  }
   0xc   :  { %510 = dma.done.wait [#allocation4], 256  }
   0xd   :  { %511 = vsyncadd [#allocation4], 4294967040 }
   0xe   :  { %512 = dma.done.wait [#allocation7], 2048  }
   0xf   :  { %513 = vsyncadd [#allocation7], 4294965248  ;;  %v387_v0 = vld [vmem:[#allocation6 + $0x38] sm:$0xff]  ;;  %v386_v1 = vld [vmem:[#allocation6 + $0x30] sm:$0xff]  ;;  %v114_v15 = vstv %s594_s0  ;;  %s300_s26 = sshll.u32 %s601_s7, 4  ;;  %s301_s26 = int_to_ptr.hbm [resolvable:$true] %s300_s26 }
  0x10   :  { %167 = vmatpush.bf16.msra.mxu0 %v387_v0  ;;  %v385_v2 = vld [vmem:[#allocation6 + $0x28] sm:$0xff]  ;;  %v384_v3 = vld [vmem:[#allocation6 + $0x20] sm:$0xff]  ;;  %v383_v4 = vld [vmem:[#allocation6 + $0x18] sm:$0xff] }
  0x11   :  { %v382_v5 = vld [vmem:[#allocation6 + $0x10] sm:$0xff]  ;;  %v381_v6 = vld [vmem:[#allocation6 + $0x8] sm:$0xff]  ;;  %v380_v7 = vld [vmem:[#allocation6] sm:$0xff] }
  0x12   :  { %v76_v8 = vld [vmem:[#allocation3] sm:$0xff]  ;;  %v77_v9 = vld [vmem:[#allocation3 + $0x8] sm:$0xff]  ;;  %v393_v13 = vld [vmem:[#allocation8 + $0x28] sm:$0xff] }
  0x13   :  { %v113_v10 = vpack.c.bf16 %v77_v9, %v76_v8  ;;  %v395_v11 = vld [vmem:[#allocation8 + $0x38] sm:$0xff]  ;;  %v394_v12 = vld [vmem:[#allocation8 + $0x30] sm:$0xff]  ;;  %v392_v16 = vld [vmem:[#allocation8 + $0x20] sm:$0xff] }
  0x14   :  { %168 = vmatpush.bf16.msra.mxu0 %v386_v1  ;;  %278 = vmatpush.bf16.msra.mxu1 %v395_v11  ;;  %v94_v14 = vld [vmem:[%s597_s3] sm:$0x1]  ;;  %v391_v18 = vld [vmem:[#allocation8 + $0x18] sm:$0xff]  ;;  %v389_v24 = vld [vmem:[#allocation8 + $0x8] sm:$0xff] }
  0x15   :  { %v115_v17 = vmul.f32 %v114_v15, %v94_v14  ;;  %v390_v20 = vld [vmem:[#allocation8 + $0x10] sm:$0xff]  ;;  %v388_v27 = vld [vmem:[#allocation8] sm:$0xff] }
  0x16   :  { %v404_v21 = vld [vmem:[%s598_s4] ss:$0 sm:$0xff]  ;;  %s523_s4 = smov [#allocation9]  }
  0x17   :  { %v117_v19 = vperm.slane %v115_v17, 0  ;;  %v405_v59 = vld [vmem:[%s600_s6] ss:$0 sm:$0xff]  ;;  %s298_s23 = sshll.u32 %s523_s4, 4  ;;  %s299_s23 = int_to_ptr.vmem [resolvable:$true] %s298_s23 }
  0x18   :  { %169 = vmatpush.bf16.msra.mxu0 %v385_v2  ;;  %279 = vmatpush.bf16.msra.mxu1 %v394_v12 }
  0x1c   :  { %170 = vmatpush.bf16.msra.mxu0 %v384_v3  ;;  %280 = vmatpush.bf16.msra.mxu1 %v393_v13 }
  0x20   :  { %171 = vmatpush.bf16.msra.mxu0 %v383_v4  ;;  %281 = vmatpush.bf16.msra.mxu1 %v392_v16 }
  0x24   :  { %172 = vmatpush.bf16.msra.mxu0 %v382_v5  ;;  %282 = vmatpush.bf16.msra.mxu1 %v391_v18 }
  0x28   :  { %173 = vmatpush.bf16.msra.mxu0 %v381_v6  ;;  %283 = vmatpush.bf16.msra.mxu1 %v390_v20 }
  0x2c   :  { %174 = vmatpush.bf16.msra.mxu0 %v380_v7  ;;  %284 = vmatpush.bf16.msra.mxu1 %v389_v24 }
  0x2f   :  { %175 = vmatmul.bf16.vlgmr.msra.gmra.mxu0 %v113_v10 }
  0x30   :  { %285 = vmatpush.bf16.msra.mxu1 %v388_v27 }
  0xac   :  { %v176_v22 = vpop.f32.mrf.mxu0 }
  0xad   :  { %v177_v23 = vadd.f32 %v176_v22, %v117_v19 }
  0xaf   :  { %v184_v25 = vadd.f32 %v404_v21, %v177_v23 }
  0xb1   :  { %v346_v26 = vmul.f32 -1.442695, %v184_v25 }
  0xb3   :  { %406 = vpow2.f32 %v346_v26 }
  0xb4   :  { %v178_v28 = vpop.f32.mrf.mxu0 }
  0xb5   :  { %v179_v29 = vadd.f32 %v178_v28, %v117_v19 }
  0xb7   :  { %v185_v30 = vadd.f32 %v404_v21, %v179_v29 }
  0xb9   :  { %v407_v31 = vpop.eup %406  ;;  %v347_v32 = vmul.f32 -1.442695, %v185_v30 }
  0xba   :  { %v192_v33 = vadd.f32 1.0, %v407_v31 }
  0xbb   :  { %408 = vpow2.f32 %v347_v32 }
  0xbc   :  { %410 = vrcp.f32 %v192_v33  ;;  %v205_v43 = vand.u32 2147483648, %v192_v33  ;;  %vm199_vm1 = vweird.f32 %v192_v33  ;;  %v203_v44 = vand.u32 2147483647, %v192_v33 }
  0xbe   :  { %v206_v50 = vor.u32 1.1754944e-38, %v205_v43  ;;  %vm204_vm4 = vcmp.eq.f32.partialorder %v203_v44, 8.507059e+37 }
  0xc1   :  { %v409_v34 = vpop.eup %408 }
  0xc2   :  { %v411_v35 = vpop.eup %410  ;;  %v193_v36 = vadd.f32 1.0, %v409_v34 }
  0xc3   :  { %v195_v37 = vmul.f32 %v411_v35, %v192_v33  ;;  %vm200_vm0 = vweird.f32 %v411_v35 }
  0xc4   :  { %412 = vrcp.f32 %v193_v36  ;;  %vm201_vm2 = vmor %vm199_vm1, %vm200_vm0  ;;  %v220_v46 = vand.u32 2147483648, %v193_v36  ;;  %v218_v49 = vand.u32 2147483647, %v193_v36  ;;  %vm214_vm5 = vweird.f32 %v193_v36 }
  0xc5   :  { %v196_v38 = vsub.f32 1.0, %v195_v37 }
  0xc6   :  { %v221_v53 = vor.u32 1.1754944e-38, %v220_v46  ;;  %vm219_vm7 = vcmp.eq.f32.partialorder %v218_v49, 8.507059e+37 }
  0xc7   :  { %v197_v39 = vmul.f32 %v411_v35, %v196_v38 }
  0xc9   :  { %v198_v41 = vadd.f32 %v411_v35, %v197_v39 }
  0xca   :  { %v413_v40 = vpop.eup %412 }
  0xcb   :  { %v210_v42 = vmul.f32 %v413_v40, %v193_v36  ;;  %v202_v47 = vsel %vm201_vm2, %v411_v35, %v198_v41  ;;  %vm215_vm3 = vweird.f32 %v413_v40 }
  0xcc   :  { %v207_v52 = vsel %vm204_vm4, %v206_v50, %v202_v47  ;;  %vm216_vm6 = vmor %vm214_vm5, %vm215_vm3 }
  0xcd   :  { %v211_v45 = vsub.f32 1.0, %v210_v42  ;;  %v224_v56 = vmul.f32 %v207_v52, %v184_v25 }
  0xcf   :  { %v212_v48 = vmul.f32 %v413_v40, %v211_v45 }
  0xd1   :  { %v213_v51 = vadd.f32 %v413_v40, %v212_v48 }
  0xd3   :  { %v217_v54 = vsel %vm216_vm6, %v413_v40, %v213_v51 }
  0xd4   :  { %v222_v55 = vsel %vm219_vm7, %v221_v53, %v217_v54 }
  0xd5   :  { %v225_v57 = vmul.f32 %v222_v55, %v185_v30 }
  0xd7   :  { %v226_v58 = vpack.c.bf16 %v225_v57, %v224_v56 }
  0xd9   :  { %286 = vmatmul.bf16.vlgmr.msra.gmra.mxu1 %v226_v58 }
 0x156   :  { %v287_v60 = vpop.f32.mrf.mxu1 }
 0x157   :  { %v288_v61 = vadd.f32 %v405_v59, %v287_v60 }
 0x159   :  { %292 = vst [vmem:[#allocation9] sm:$0xff] %v288_v61 }
 0x15e   :  { %v289_v62 = vpop.f32.mrf.mxu1 }
 0x15f   :  { %v290_v63 = vadd.f32 %v405_v59, %v289_v62 }
 0x161   :  { %293 = vst [vmem:[#allocation9 + $0x8] sm:$0xff] %v290_v63 }
 0x162   :  { %306 = dma.vmem_to_hbm [thread:$0]  %s299_s23, 256, %s301_s26, [#allocation5], %s520_s13, %s520_s13, %s521_s14  }
 0x163   :  { %514 = dma.done.wait [#allocation5], 256  }
 0x164   :  { %515 = vsyncadd [#allocation5], 4294967040 }
 0x165   :  { %311 = vsyncpa [#allocation4], 1 }
 0x166   :  { %312 = vsyncpa [#allocation7], 1 }
 0x167   :  { %313 = vsyncpa [#allocation5], 1 }

// kernel: tpu_custom_call.1
= control target key start
LH: loop header
LB: loop body
LE: loop exit
PB: predicated region body
PF: predicated region fallthrough
CT: control target
= control target key end

     0   :  { %13 = vsyncpa [#allocation4], 0  ;;  %s594_s0 = inlined_call_operand.<no memory space> [shape: f32[1], index: 0, kind: input, shape index: {}]   ;;  %s595_s1 = inlined_call_operand.hbm [shape: f32[16,128], index: 1, kind: input, shape index: {}]   ;;  %s596_s2 = inlined_call_operand.hbm [shape: bf16[128,128], index: 2, kind: input, shape index: {}]   ;;  %s597_s3 = inlined_call_operand.vmem [shape: f32[1,128], index: 3, kind: input, shape index: {}]   ;;  %s598_s4 = inlined_call_operand.vmem [shape: f32[1,128], index: 4, kind: input, shape index: {}]   ;;  %s599_s5 = inlined_call_operand.hbm [shape: bf16[128,128], index: 5, kind: input, shape index: {}]   ;;  %s600_s6 = inlined_call_operand.vmem [shape: f32[1,128], index: 6, kind: input, shape index: {}]   ;;  %s601_s7 = inlined_call_operand.hbm [shape: f32[16,128], index: 7, kind: output, shape index: {}]  }
   0x1   :  { %14 = vsyncpa [#allocation7], 0  ;;  %s35_s26 = sshll.u32 %s596_s2, 4  ;;  %s36_s26 = int_to_ptr.hbm [resolvable:$true] %s35_s26 }
   0x2   :  { %15 = vsyncpa [#allocation5], 0  ;;  %s516_s27 = smov [#allocation6]   ;;  %s22_s8 = sshll.u32 %s595_s1, 4  ;;  %s23_s8 = int_to_ptr.hbm [resolvable:$true] %s22_s8 }
   0x3   :  { %s37_s28 = sshll.u32 %s516_s27, 4  ;;  %s517_s9 = smov 64   ;;  %s38_s28 = int_to_ptr.vmem [resolvable:$true] %s37_s28 }
   0x4   :  { %s518_s10 = smov 4   ;;  %s519_s11 = smov [#allocation3]  }
   0x5   :  { %43 = dma.hbm_to_vmem [thread:$0]  %s36_s26, 1024, %s38_s28, [#allocation7], %s517_s9, %s517_s9, %s518_s10  }
   0x6   :  { %s24_s12 = sshll.u32 %s519_s11, 4  ;;  %s520_s13 = smov 128   ;;  %s25_s12 = int_to_ptr.vmem [resolvable:$true] %s24_s12 }
   0x7   :  { %s521_s14 = smov 8   ;;  %s52_s16 = sshll.u32 %s599_s5, 4  ;;  %s53_s16 = int_to_ptr.hbm [resolvable:$true] %s52_s16 }
   0x8   :  { %30 = dma.hbm_to_vmem [thread:$0]  %s23_s8, 256, %s25_s12, [#allocation4], %s520_s13, %s520_s13, %s521_s14  }
   0x9   :  { %s522_s17 = smov [#allocation8]  }
   0xa   :  { %s54_s1 = sshll.u32 %s522_s17, 4  ;;  %s55_s1 = int_to_ptr.vmem [resolvable:$true] %s54_s1 }
   0xb   :  { %60 = dma.hbm_to_vmem [thread:$0]  %s53_s16, 1024, %s55_s1, [#allocation7], %s517_s9, %s517_s9, %s518_s10  }
   0xc   :  { %510 = dma.done.wait [#allocation4], 256  }
   0xd   :  { %511 = vsyncadd [#allocation4], 4294967040 }
   0xe   :  { %512 = dma.done.wait [#allocation7], 2048  }
   0xf   :  { %513 = vsyncadd [#allocation7], 4294965248  ;;  %v387_v0 = vld [vmem:[#allocation6 + $0x38] sm:$0xff]  ;;  %v386_v1 = vld [vmem:[#allocation6 + $0x30] sm:$0xff]  ;;  %v114_v15 = vstv %s594_s0  ;;  %s300_s26 = sshll.u32 %s601_s7, 4  ;;  %s301_s26 = int_to_ptr.hbm [resolvable:$true] %s300_s26 }
  0x10   :  { %167 = vmatpush.bf16.msra.mxu0 %v387_v0  ;;  %v385_v2 = vld [vmem:[#allocation6 + $0x28] sm:$0xff]  ;;  %v384_v3 = vld [vmem:[#allocation6 + $0x20] sm:$0xff]  ;;  %v383_v4 = vld [vmem:[#allocation6 + $0x18] sm:$0xff] }
  0x11   :  { %v382_v5 = vld [vmem:[#allocation6 + $0x10] sm:$0xff]  ;;  %v381_v6 = vld [vmem:[#allocation6 + $0x8] sm:$0xff]  ;;  %v380_v7 = vld [vmem:[#allocation6] sm:$0xff] }
  0x12   :  { %v76_v8 = vld [vmem:[#allocation3] sm:$0xff]  ;;  %v77_v9 = vld [vmem:[#allocation3 + $0x8] sm:$0xff]  ;;  %v393_v13 = vld [vmem:[#allocation8 + $0x28] sm:$0xff] }
  0x13   :  { %v113_v10 = vpack.c.bf16 %v77_v9, %v76_v8  ;;  %v395_v11 = vld [vmem:[#allocation8 + $0x38] sm:$0xff]  ;;  %v394_v12 = vld [vmem:[#allocation8 + $0x30] sm:$0xff]  ;;  %v392_v16 = vld [vmem:[#allocation8 + $0x20] sm:$0xff] }
  0x14   :  { %168 = vmatpush.bf16.msra.mxu0 %v386_v1  ;;  %278 = vmatpush.bf16.msra.mxu1 %v395_v11  ;;  %v94_v14 = vld [vmem:[%s597_s3] sm:$0x1]  ;;  %v391_v18 = vld [vmem:[#allocation8 + $0x18] sm:$0xff]  ;;  %v389_v24 = vld [vmem:[#allocation8 + $0x8] sm:$0xff] }
  0x15   :  { %v115_v17 = vmul.f32 %v114_v15, %v94_v14  ;;  %v390_v20 = vld [vmem:[#allocation8 + $0x10] sm:$0xff]  ;;  %v388_v27 = vld [vmem:[#allocation8] sm:$0xff] }
  0x16   :  { %v404_v21 = vld [vmem:[%s598_s4] ss:$0 sm:$0xff]  ;;  %s523_s4 = smov [#allocation9]  }
  0x17   :  { %v117_v19 = vperm.slane %v115_v17, 0  ;;  %v405_v59 = vld [vmem:[%s600_s6] ss:$0 sm:$0xff]  ;;  %s298_s23 = sshll.u32 %s523_s4, 4  ;;  %s299_s23 = int_to_ptr.vmem [resolvable:$true] %s298_s23 }
  0x18   :  { %169 = vmatpush.bf16.msra.mxu0 %v385_v2  ;;  %279 = vmatpush.bf16.msra.mxu1 %v394_v12 }
  0x1c   :  { %170 = vmatpush.bf16.msra.mxu0 %v384_v3  ;;  %280 = vmatpush.bf16.msra.mxu1 %v393_v13 }
  0x20   :  { %171 = vmatpush.bf16.msra.mxu0 %v383_v4  ;;  %281 = vmatpush.bf16.msra.mxu1 %v392_v16 }
  0x24   :  { %172 = vmatpush.bf16.msra.mxu0 %v382_v5  ;;  %282 = vmatpush.bf16.msra.mxu1 %v391_v18 }
  0x28   :  { %173 = vmatpush.bf16.msra.mxu0 %v381_v6  ;;  %283 = vmatpush.bf16.msra.mxu1 %v390_v20 }
  0x2c   :  { %174 = vmatpush.bf16.msra.mxu0 %v380_v7  ;;  %284 = vmatpush.bf16.msra.mxu1 %v389_v24 }
  0x2f   :  { %175 = vmatmul.bf16.vlgmr.msra.gmra.mxu0 %v113_v10 }
  0x30   :  { %285 = vmatpush.bf16.msra.mxu1 %v388_v27 }
  0xac   :  { %v176_v22 = vpop.f32.mrf.mxu0 }
  0xad   :  { %v177_v23 = vadd.f32 %v176_v22, %v117_v19 }
  0xaf   :  { %v184_v25 = vadd.f32 %v404_v21, %v177_v23 }
  0xb1   :  { %v346_v26 = vmul.f32 -1.442695, %v184_v25 }
  0xb3   :  { %406 = vpow2.f32 %v346_v26 }
  0xb4   :  { %v178_v28 = vpop.f32.mrf.mxu0 }
  0xb5   :  { %v179_v29 = vadd.f32 %v178_v28, %v117_v19 }
  0xb7   :  { %v185_v30 = vadd.f32 %v404_v21, %v179_v29 }
  0xb9   :  { %v407_v31 = vpop.eup %406  ;;  %v347_v32 = vmul.f32 -1.442695, %v185_v30 }
  0xba   :  { %v192_v33 = vadd.f32 1.0, %v407_v31 }
  0xbb   :  { %408 = vpow2.f32 %v347_v32 }
  0xbc   :  { %410 = vrcp.f32 %v192_v33  ;;  %v205_v43 = vand.u32 2147483648, %v192_v33  ;;  %vm199_vm1 = vweird.f32 %v192_v33  ;;  %v203_v44 = vand.u32 2147483647, %v192_v33 }
  0xbe   :  { %v206_v50 = vor.u32 1.1754944e-38, %v205_v43  ;;  %vm204_vm4 = vcmp.eq.f32.partialorder %v203_v44, 8.507059e+37 }
  0xc1   :  { %v409_v34 = vpop.eup %408 }
  0xc2   :  { %v411_v35 = vpop.eup %410  ;;  %v193_v36 = vadd.f32 1.0, %v409_v34 }
  0xc3   :  { %v195_v37 = vmul.f32 %v411_v35, %v192_v33  ;;  %vm200_vm0 = vweird.f32 %v411_v35 }
  0xc4   :  { %412 = vrcp.f32 %v193_v36  ;;  %vm201_vm2 = vmor %vm199_vm1, %vm200_vm0  ;;  %v220_v46 = vand.u32 2147483648, %v193_v36  ;;  %v218_v49 = vand.u32 2147483647, %v193_v36  ;;  %vm214_vm5 = vweird.f32 %v193_v36 }
  0xc5   :  { %v196_v38 = vsub.f32 1.0, %v195_v37 }
  0xc6   :  { %v221_v53 = vor.u32 1.1754944e-38, %v220_v46  ;;  %vm219_vm7 = vcmp.eq.f32.partialorder %v218_v49, 8.507059e+37 }
  0xc7   :  { %v197_v39 = vmul.f32 %v411_v35, %v196_v38 }
  0xc9   :  { %v198_v41 = vadd.f32 %v411_v35, %v197_v39 }
  0xca   :  { %v413_v40 = vpop.eup %412 }
  0xcb   :  { %v210_v42 = vmul.f32 %v413_v40, %v193_v36  ;;  %v202_v47 = vsel %vm201_vm2, %v411_v35, %v198_v41  ;;  %vm215_vm3 = vweird.f32 %v413_v40 }
  0xcc   :  { %v207_v52 = vsel %vm204_vm4, %v206_v50, %v202_v47  ;;  %vm216_vm6 = vmor %vm214_vm5, %vm215_vm3 }
  0xcd   :  { %v211_v45 = vsub.f32 1.0, %v210_v42  ;;  %v224_v56 = vmul.f32 %v207_v52, %v184_v25 }
  0xcf   :  { %v212_v48 = vmul.f32 %v413_v40, %v211_v45 }
  0xd1   :  { %v213_v51 = vadd.f32 %v413_v40, %v212_v48 }
  0xd3   :  { %v217_v54 = vsel %vm216_vm6, %v413_v40, %v213_v51 }
  0xd4   :  { %v222_v55 = vsel %vm219_vm7, %v221_v53, %v217_v54 }
  0xd5   :  { %v225_v57 = vmul.f32 %v222_v55, %v185_v30 }
  0xd7   :  { %v226_v58 = vpack.c.bf16 %v225_v57, %v224_v56 }
  0xd9   :  { %286 = vmatmul.bf16.vlgmr.msra.gmra.mxu1 %v226_v58 }
 0x156   :  { %v287_v60 = vpop.f32.mrf.mxu1 }
 0x157   :  { %v288_v61 = vadd.f32 %v405_v59, %v287_v60 }
 0x159   :  { %292 = vst [vmem:[#allocation9] sm:$0xff] %v288_v61 }
 0x15e   :  { %v289_v62 = vpop.f32.mrf.mxu1 }
 0x15f   :  { %v290_v63 = vadd.f32 %v405_v59, %v289_v62 }
 0x161   :  { %293 = vst [vmem:[#allocation9 + $0x8] sm:$0xff] %v290_v63 }
 0x162   :  { %306 = dma.vmem_to_hbm [thread:$0]  %s299_s23, 256, %s301_s26, [#allocation5], %s520_s13, %s520_s13, %s521_s14  }
 0x163   :  { %514 = dma.done.wait [#allocation5], 256  }
 0x164   :  { %515 = vsyncadd [#allocation5], 4294967040 }
 0x165   :  { %311 = vsyncpa [#allocation4], 1 }
 0x166   :  { %312 = vsyncpa [#allocation7], 1 }
 0x167   :  { %313 = vsyncpa [#allocation5], 1 }

</bundles_post_ra>
